<compile_context>
chip_gen: v5e
topology: v5e:2x2
jax: 0.10.0
libtpu: 0.0.40
codegen_flags: <defaults>
</compile_context>

<pallas_src>
import functools

import jax
import jax.numpy as jnp
from jax.experimental import pallas as pl
from jax.experimental.pallas import tpu as pltpu


def _round_up(x: int, m: int) -> int:
    return (x + m - 1) // m * m


def _vmem_limit_bytes() -> int:
    """~80% of physical VMEM, capped at 110 MiB (v5e/v6e); safe fallback 48 MiB."""
    try:
        cap = pltpu.get_tpu_info().vmem_capacity_bytes
        return min(int(cap * 0.8), 110 << 20)
    except Exception:
        return 48 << 20  # conservative: fits v7x's 64 MiB per-core VMEM


def mlp_kernel(x_ref, w_ref, b_ref, o_ref):
    """One (tm, tn) output tile; o_ref (f32, resident across K) is the accumulator.

    x_ref: (tm, tk)  bf16 activation tile
    w_ref: (tk, tn)  bf16 weight tile (pre-transposed (D_in, D_out) layout)
    b_ref: (1,  tn)  f32 bias tile
    o_ref: (tm, tn)  f32 output tile / accumulator
    """
    k = pl.program_id(2)
    nk = pl.num_programs(2)

    part = jnp.dot(x_ref[...], w_ref[...], preferred_element_type=jnp.float32)

    @pl.when(k == 0)
    def _():
        o_ref[...] = part            # direct write: no zero-fill + read-modify

    @pl.when(k > 0)
    def _():
        o_ref[...] += part

    @pl.when(k == nk - 1)
    def _():
        # Fused bias + ReLU epilogue; output stays f32 (PyTorch semantics).
        o_ref[...] = jnp.maximum(o_ref[...] + b_ref[...], 0.0)


@functools.partial(jax.jit, static_argnames=("tm", "tn", "tk"))
def mlp_layer(x, weight_t, bias, *, tm: int = 512, tn: int = 512, tk: int = 1024):
    """x: (B, D_in) f32; weight_t: (D_in, D_out) (pre-transposed, bf16 preferred);
    bias: (D_out,) f32.  Returns relu(x @ W^T + b) as f32."""
    B, D_in = x.shape
    K_w, D_out = weight_t.shape
    assert K_w == D_in

    # Hardware-friendly padded sizes: lanes=128, bf16 sublane packing=16 rows.
    Bp = _round_up(B, 16)
    Kp = _round_up(D_in, 128)
    Np = _round_up(D_out, 128)

    # Clamp tiles to the (padded) problem and re-align.
    tm = _round_up(min(tm, Bp), 16)
    tn = _round_up(min(tn, Np), 128)
    tk = _round_up(min(tk, Kp), 128)

    # Make padded dims divisible by the tiles.
    Bp = _round_up(Bp, tm)
    Np = _round_up(Np, tn)
    Kp = _round_up(Kp, tk)

    # v7x has 2 TensorCores: ensure at least one *parallel* grid axis has >= 2
    # blocks so megacore sharding can engage (shrink tn when batch is tiny).
    if Bp // tm < 2 and Np // tn < 2 and Np >= 256:
        tn = max(128, (Np // 2) // 128 * 128)
        Np = _round_up(Np, tn)

    # bf16 operands for the MXU; pads statically skipped when already aligned.
    # K zero-padding is load-bearing for correctness when D_in is unaligned.
    xp = x.astype(jnp.bfloat16)
    if (Bp, Kp) != (B, D_in):
        xp = jnp.pad(xp, ((0, Bp - B), (0, Kp - D_in)))
    wp = weight_t.astype(jnp.bfloat16)           # no-op if already bf16
    if (Kp, Np) != (D_in, D_out):
        wp = jnp.pad(wp, ((0, Kp - D_in), (0, Np - D_out)))
    bp = bias.astype(jnp.float32)
    if Np != D_out:
        bp = jnp.pad(bp, (0, Np - D_out))
    bp = bp.reshape(1, Np)

    grid = (Bp // tm, Np // tn, Kp // tk)
    gm, gn, gk = grid

    flops = 2 * Bp * Np * Kp
    # Re-read-aware HBM byte estimate (bf16 x/W, f32 bias/out).
    bytes_accessed = 2 * Bp * Kp * gn + 2 * Kp * Np * gm + 4 * Np + 4 * Bp * Np

    out_padded = pl.pallas_call(
        mlp_kernel,
        out_shape=jax.ShapeDtypeStruct((Bp, Np), jnp.float32),
        grid_spec=pltpu.PrefetchScalarGridSpec(
            num_scalar_prefetch=0,
            grid=grid,
            in_specs=[
                pl.BlockSpec((tm, tk), lambda i, j, k: (i, k)),   # x tile
                pl.BlockSpec((tk, tn), lambda i, j, k: (k, j)),   # W^T tile (canonical NN dot)
                pl.BlockSpec((1, tn), lambda i, j, k: (0, j)),    # bias tile
            ],
            out_specs=pl.BlockSpec((tm, tn), lambda i, j, k: (i, j)),
        ),
        compiler_params=pltpu.CompilerParams(
            dimension_semantics=("parallel", "parallel", "arbitrary"),
            vmem_limit_bytes=_vmem_limit_bytes(),
        ),
        cost_estimate=pl.CostEstimate(
            flops=flops, transcendentals=0, bytes_accessed=bytes_accessed),
    )(xp, wp, bp)

    return out_padded[:B, :D_out]


def reference(x, weight, bias):
    return jnp.maximum(x @ weight.T + bias, 0.0)


if __name__ == "__main__":
    # Small shapes consistent with MLPLayer(input_size, output_size).
    batch, input_size, output_size = 8, 32, 64

    key = jax.random.PRNGKey(0)
    kx, kw, kb = jax.random.split(key, 3)

    # Deterministic parameter init (mimics nn.Linear's uniform(-1/sqrt(fan_in), ...)).
    bound = 1.0 / jnp.sqrt(jnp.float32(input_size))
    weight = jax.random.uniform(kw, (output_size, input_size), jnp.float32,
                                minval=-bound, maxval=bound)
    bias = jax.random.uniform(kb, (output_size,), jnp.float32,
                              minval=-bound, maxval=bound)
    x = jax.random.normal(kx, (batch, input_size), jnp.float32)

    # One-time, model-load-style parameter prep: transpose to (D_in, D_out)
    # and cast to bf16 — outside the per-call path (the weight is static).
    weight_t = jnp.asarray(weight.T, dtype=jnp.bfloat16)

    out = mlp_layer(x, weight_t, bias)
    out = jax.block_until_ready(out)

    ref = reference(x, weight, bias)
    assert out.shape == (batch, output_size)
    assert out.dtype == jnp.float32
    # bf16 MXU operands with f32 accumulation: small, bounded mismatch vs. the
    # pure-f32 reference, so the tolerance is loosened accordingly.
    assert jnp.allclose(out, ref, atol=5e-2, rtol=5e-2)
    print("KERNEL_OK")
</pallas_src>

<mosaic_0001>
module attributes {stable_mosaic.version = 11 : i64} {
  func.func @mlp_kernel(%arg0: i32, %arg1: i32, %arg2: i32, %arg3: memref<16x128xbf16, #tpu.memory_space<vmem>>, %arg4: memref<128x128xbf16, #tpu.memory_space<vmem>>, %arg5: memref<1x128xf32, #tpu.memory_space<vmem>>, %arg6: memref<16x128xf32, #tpu.memory_space<vmem>>) attributes {dimension_semantics = [#tpu.dimension_semantics<parallel>, #tpu.dimension_semantics<parallel>, #tpu.dimension_semantics<arbitrary>], iteration_bounds = array<i64: 1, 1, 1>, scalar_prefetch = 0 : i64, scratch_operands = 0 : i64, tpu.core_type = #tpu.core_type<tc>, window_params = [{transform_indices = @transform_0, window_bounds = array<i64: 16, 128>}, {transform_indices = @transform_1, window_bounds = array<i64: 128, 128>}, {transform_indices = @transform_2, window_bounds = array<i64: 1, 128>}, {transform_indices = @transform_3, window_bounds = array<i64: 16, 128>}]} {
    %c0 = arith.constant 0 : index
    %c0_0 = arith.constant 0 : index
    %0 = vector.load %arg3[%c0, %c0_0] : memref<16x128xbf16, #tpu.memory_space<vmem>>, vector<16x128xbf16>
    %c0_1 = arith.constant 0 : index
    %c0_2 = arith.constant 0 : index
    %1 = vector.load %arg4[%c0_1, %c0_2] : memref<128x128xbf16, #tpu.memory_space<vmem>>, vector<128x128xbf16>
    %cst = arith.constant dense<0.000000e+00> : vector<16x128xf32>
    %2 = tpu.matmul %0, %1, %cst {dimension_numbers = #tpu.dot_dimension_numbers<[1], [0], [0], [1], [0, 0, 1, 1], [], []>} : vector<16x128xbf16>, vector<128x128xbf16>, vector<16x128xf32> -> vector<16x128xf32>
    %c0_i32 = arith.constant 0 : i32
    %3 = arith.cmpi eq, %arg2, %c0_i32 : i32
    %4 = arith.extui %3 : i1 to i32
    %c0_i32_3 = arith.constant 0 : i32
    %5 = arith.cmpi ne, %4, %c0_i32_3 : i32
    scf.if %5 {
      %c0_8 = arith.constant 0 : index
      %c0_9 = arith.constant 0 : index
      %12 = vector.load %arg6[%c0_8, %c0_9] : memref<16x128xf32, #tpu.memory_space<vmem>>, vector<16x128xf32>
      tpu.vector_store %arg6[%c0_8, %c0_9], %2 {strides = array<i32>} : memref<16x128xf32, #tpu.memory_space<vmem>>, vector<16x128xf32>,
    } else {
    }
    %c0_i32_4 = arith.constant 0 : i32
    %6 = arith.cmpi sgt, %arg2, %c0_i32_4 : i32
    %7 = arith.extui %6 : i1 to i32
    %c0_i32_5 = arith.constant 0 : i32
    %8 = arith.cmpi ne, %7, %c0_i32_5 : i32
    scf.if %8 {
      %c0_8 = arith.constant 0 : index
      %c0_9 = arith.constant 0 : index
      %12 = vector.load %arg6[%c0_8, %c0_9] : memref<16x128xf32, #tpu.memory_space<vmem>>, vector<16x128xf32>
      %13 = arith.addf %12, %2 : vector<16x128xf32>
      %c0_10 = arith.constant 0 : index
      %c0_11 = arith.constant 0 : index
      %14 = vector.load %arg6[%c0_10, %c0_11] : memref<16x128xf32, #tpu.memory_space<vmem>>, vector<16x128xf32>
      tpu.vector_store %arg6[%c0_10, %c0_11], %13 {strides = array<i32>} : memref<16x128xf32, #tpu.memory_space<vmem>>, vector<16x128xf32>,
    } else {
    }
    %c0_i32_6 = arith.constant 0 : i32
    %9 = arith.cmpi eq, %arg2, %c0_i32_6 : i32
    %10 = arith.extui %9 : i1 to i32
    %c0_i32_7 = arith.constant 0 : i32
    %11 = arith.cmpi ne, %10, %c0_i32_7 : i32
    scf.if %11 {
      %c0_8 = arith.constant 0 : index
      %c0_9 = arith.constant 0 : index
      %12 = vector.load %arg6[%c0_8, %c0_9] : memref<16x128xf32, #tpu.memory_space<vmem>>, vector<16x128xf32>
      %c0_10 = arith.constant 0 : index
      %c0_11 = arith.constant 0 : index
      %13 = vector.load %arg5[%c0_10, %c0_11] : memref<1x128xf32, #tpu.memory_space<vmem>>, vector<1x128xf32>
      %14 = vector.broadcast %13 : vector<1x128xf32> to vector<16x128xf32>
      %15 = arith.addf %12, %14 : vector<16x128xf32>
      %cst_12 = arith.constant 0.000000e+00 : f32
      %16 = vector.broadcast %cst_12 : f32 to vector<16x128xf32>
      %17 = arith.maximumf %15, %16 : vector<16x128xf32>
      %c0_13 = arith.constant 0 : index
      %c0_14 = arith.constant 0 : index
      %18 = vector.load %arg6[%c0_13, %c0_14] : memref<16x128xf32, #tpu.memory_space<vmem>>, vector<16x128xf32>
      tpu.vector_store %arg6[%c0_13, %c0_14], %17 {strides = array<i32>} : memref<16x128xf32, #tpu.memory_space<vmem>>, vector<16x128xf32>,
    } else {
    }
    return
  }
  func.func @transform_0(%arg0: i32, %arg1: i32, %arg2: i32) -> (i32, i32) {
    %c0_i32 = arith.constant 0 : i32
    return %arg0, %arg2 : i32, i32
  }
  func.func @transform_1(%arg0: i32, %arg1: i32, %arg2: i32) -> (i32, i32) {
    %c0_i32 = arith.constant 0 : i32
    return %arg2, %arg1 : i32, i32
  }
  func.func @transform_2(%arg0: i32, %arg1: i32, %arg2: i32) -> (i32, i32) {
    %c0_i32 = arith.constant 0 : i32
    %c0_i32_0 = arith.constant 0 : i32
    return %c0_i32, %arg1 : i32, i32
  }
  func.func @transform_3(%arg0: i32, %arg1: i32, %arg2: i32) -> (i32, i32) {
    %c0_i32 = arith.constant 0 : i32
    return %arg0, %arg1 : i32, i32
  }
}

</mosaic_0001>

<bundles_post_ra>
// kernel: mlp_layer.1
= control target key start
LH: loop header
LB: loop body
LE: loop exit
PB: predicated region body
PF: predicated region fallthrough
CT: control target
= control target key end

     0   :  { %s237_s1 = inlined_call_operand.vmem [shape: bf16[128,128], index: 1, kind: input, shape index: {}]   ;;  %s238_s2 = inlined_call_operand.vmem [shape: f32[1,128], index: 2, kind: input, shape index: {}]   ;;  %s239_s0 = inlined_call_operand.vmem [shape: bf16[16,128], index: 0, kind: input, shape index: {}]   ;;  %s240_s3 = inlined_call_operand.vmem [shape: f32[16,128], index: 3, kind: output, shape index: {}]  }
   0x1   :  { %v179_v0 = vld [vmem:[%s237_s1 + $0x38] sm:$0xff]  ;;  %v178_v1 = vld [vmem:[%s237_s1 + $0x30] sm:$0xff]  ;;  %v177_v2 = vld [vmem:[%s237_s1 + $0x28] sm:$0xff] }
   0x2   :  { %86 = vmatpush.bf16.msra.mxu0 %v179_v0  ;;  %v176_v3 = vld [vmem:[%s237_s1 + $0x20] sm:$0xff]  ;;  %v175_v4 = vld [vmem:[%s237_s1 + $0x18] sm:$0xff]  ;;  %v174_v5 = vld [vmem:[%s237_s1 + $0x10] sm:$0xff] }
   0x3   :  { %v173_v6 = vld [vmem:[%s237_s1 + $0x8] sm:$0xff]  ;;  %v172_v7 = vld [vmem:[%s237_s1] sm:$0xff] }
   0x4   :  { %v171_v8 = vld [vmem:[%s239_s0] sm:$0xff] }
   0x5   :  { %v180_v9 = vld [vmem:[%s238_s2] ss:$0 sm:$0xff] }
   0x6   :  { %87 = vmatpush.bf16.msra.mxu0 %v178_v1 }
   0xa   :  { %88 = vmatpush.bf16.msra.mxu0 %v177_v2 }
   0xe   :  { %89 = vmatpush.bf16.msra.mxu0 %v176_v3 }
  0x12   :  { %90 = vmatpush.bf16.msra.mxu0 %v175_v4 }
  0x16   :  { %91 = vmatpush.bf16.msra.mxu0 %v174_v5 }
  0x1a   :  { %92 = vmatpush.bf16.msra.mxu0 %v173_v6 }
  0x1e   :  { %93 = vmatpush.bf16.msra.mxu0 %v172_v7 }
  0x21   :  { %94 = vmatmul.bf16.vlgmr.msra.gmra.mxu0 %v171_v8 }
  0x9e   :  { %v95_v10 = vpop.f32.mrf.mxu0 }
  0x9f   :  { %v125_v11 = vadd.f32 %v180_v9, %v95_v10 }
  0xa1   :  { %v127_v12 = vmax.f32 %v125_v11, 0.0 }
  0xa3   :  { %129 = vst [vmem:[%s240_s3] sm:$0xff] %v127_v12 }
  0xa6   :  { %v97_v13 = vpop.f32.mrf.mxu0 }
  0xa7   :  { %v126_v14 = vadd.f32 %v180_v9, %v97_v13 }
  0xa9   :  { %v128_v15 = vmax.f32 %v126_v14, 0.0 }
  0xab   :  { %130 = vst [vmem:[%s240_s3 + $0x8] sm:$0xff] %v128_v15 }

</bundles_post_ra>
